<compile_context>
chip_gen: v5e
topology: v5e:2x2
jax: 0.10.0
libtpu: 0.0.40
codegen_flags: <defaults>
</compile_context>

<pallas_src>
import functools

import jax
import jax.numpy as jnp
from jax.experimental import pallas as pl
from jax.experimental.pallas import tpu as pltpu


def _round_up(x, m):
    return ((x + m - 1) // m) * m


def encoder_kernel(s_ref, a_ref, deg_ref, fws_ref, fwn_ref, out_ref, acc_ref):
    k = pl.program_id(1)

    @pl.when(k == 0)
    def _():
        acc_ref[...] = jnp.zeros_like(acc_ref)

    # Self half: bias already folded into FW_self (each one-hot row sums to 1).
    hs = jnp.dot(s_ref[...], fws_ref[...], preferred_element_type=jnp.float32)
    # Neighbor half: exact 0/1 adjacency on the MXU; 1/deg applied in f32 on
    # the EUP/VPU slots (both idle here), removing the bf16 rounding of 1/deg.
    hn = jnp.dot(a_ref[...], fwn_ref[...], preferred_element_type=jnp.float32)
    inv_deg = pl.reciprocal(deg_ref[...], approx=True)          # [tb, 1] f32
    acc_ref[...] += hs + hn * inv_deg

    @pl.when(k == pl.num_programs(1) - 1)
    def _():
        out_ref[...] = jnp.maximum(acc_ref[...], 0.0).astype(out_ref.dtype)


@functools.partial(jax.jit, static_argnames=("tb", "tk"))
def encoder_pallas(s, a, deg, fw_self, fw_neigh, *, tb=None, tk=None):
    B, Np = s.shape
    Np2, Dp = fw_self.shape
    assert Np == Np2 and a.shape == (B, Np) and fw_neigh.shape == (Np, Dp)
    assert deg.shape == (B, 1)
    assert Np % 128 == 0 and Dp % 128 == 0, "pad K and output dims to 128"

    if tb is None:
        if B <= 128:
            # One grid step for small batches (per-step overhead ~0.35us).
            tb = B
        else:
            # >= 2 "parallel" steps so both v7x TensorCores get work; 256-row
            # tiles when there are still >= 2 of them (fills v6e's 256x256 MXU).
            tb = 256 if (B % 256 == 0 and B >= 512) else 128
    # TODO(synk): batches that are not a multiple of the row tile need a padded
    # or masked tail tile.
    assert B % tb == 0, "B must be a multiple of the row tile"
    assert tb % 16 == 0, "bf16 rows pack 16 per sublane group"

    if tk is None:
        tk = Np
        # Tile the contraction once the fused weight slabs would stress VMEM
        # (notably v7x's 64 MiB); keep the K tile a multiple of 128.
        while tk > 2048 and tk % 256 == 0:
            tk //= 2
    assert Np % tk == 0 and tk % 128 == 0
    num_k = Np // tk

    # Grid-invariant FW slabs need only a single buffer; double-buffer once the
    # contraction is tiled (blocks then change along k).
    fw_mode = pl.Buffered(1) if num_k == 1 else pl.Buffered(2)
    fw_bufs = 1 if num_k == 1 else 2

    # VMEM budget computed from actual buffer sizes (not a hardcoded limit).
    bytes_needed = (
        2 * 2 * tb * tk * 2            # S + A tiles, double-buffered, bf16
        + fw_bufs * 2 * tk * Dp * 2    # FW_self + FW_neigh slabs, bf16
        + 2 * tb * Dp * 2              # bf16 output tile, double-buffered
        + 2 * tb * 128 * 4             # deg tile (lane-padded), f32
        + tb * Dp * 4                  # f32 accumulator scratch
    )
    vmem_limit = int(min(max(2 * bytes_needed, 16 * 1024 * 1024),
                         64 * 1024 * 1024))

    return pl.pallas_call(
        encoder_kernel,
        # bf16 output: halves writeback bytes on the lane-padded output.
        out_shape=jax.ShapeDtypeStruct((B, Dp), jnp.bfloat16),
        grid_spec=pltpu.PrefetchScalarGridSpec(
            num_scalar_prefetch=0,
            grid=(B // tb, num_k),
            in_specs=[
                pl.BlockSpec((tb, tk), lambda i, k: (i, k)),           # S one-hot
                pl.BlockSpec((tb, tk), lambda i, k: (i, k)),           # A binary
                pl.BlockSpec((tb, 1), lambda i, k: (i, 0)),            # deg (f32)
                pl.BlockSpec((tk, Dp), lambda i, k: (k, 0),
                             pipeline_mode=fw_mode),                   # FW_self + b
                pl.BlockSpec((tk, Dp), lambda i, k: (k, 0),
                             pipeline_mode=fw_mode),                   # FW_neigh
            ],
            out_specs=pl.BlockSpec((tb, Dp), lambda i, k: (i, 0)),
            scratch_shapes=[pltpu.VMEM((tb, Dp), jnp.float32)],
        ),
        compiler_params=pltpu.CompilerParams(
            dimension_semantics=("parallel", "arbitrary"),
            vmem_limit_bytes=vmem_limit,
        ),
    )(s, a, deg, fw_self, fw_neigh)


def prepare_encoder_operands(nodes, edge_index, features, weight, bias):
    """JAX glue: fold get_neighbors(), the mean aggregator, the self-gather,
    the concat and the Linear into kernel operands, using scatter-adds instead
    of dense one-hot matmuls.

      relu(S @ FWs + (A @ FWn)/deg)
        == relu(concat([features[nodes], mean_nbr(features)]) @ W.T + b)
    """
    N, F = features.shape
    D = weight.shape[0]
    B = nodes.shape[0]
    Np = _round_up(N, 128)
    Dp = _round_up(D, 128)

    src, dst = edge_index[0], edge_index[1]
    # Map each edge source to its batch row (-1 if the source is not queried).
    # TODO(synk): assumes the batch node ids are distinct (as in the reference
    # get_neighbors dict); duplicated query nodes would need per-row handling.
    node_to_row = jnp.full((N,), -1, dtype=jnp.int32).at[nodes].set(
        jnp.arange(B, dtype=jnp.int32))
    row = node_to_row[src]                                   # [E]
    valid = (row >= 0).astype(jnp.float32)
    row_safe = jnp.where(row >= 0, row, 0)
    counts = jnp.zeros((B, Np), jnp.float32).at[row_safe, dst].add(valid)
    binary = (counts > 0).astype(jnp.float32)                # set-of-neighbors
    deg = jnp.maximum(binary.sum(axis=1, keepdims=True), 1.0)  # [B, 1] f32

    s_onehot = jnp.zeros((B, Np), jnp.float32).at[
        jnp.arange(B), nodes].set(1.0)                       # [B, Np]

    # concat([self, neigh]) @ W.T == self @ W_self + neigh @ W_neigh
    w_t = weight.T                                           # [F + D, D]
    w_self, w_neigh = w_t[:F], w_t[F:]
    # Bias folds into the self half exactly: each one-hot row of S sums to 1.
    fw_self = features @ w_self + bias[None, :]              # [N, D]
    fw_neigh = features @ w_neigh                            # [N, D]
    fw_self = jnp.pad(fw_self, ((0, Np - N), (0, Dp - D)))   # lane/K-dense
    fw_neigh = jnp.pad(fw_neigh, ((0, Np - N), (0, Dp - D)))

    return (s_onehot.astype(jnp.bfloat16),
            binary.astype(jnp.bfloat16),
            deg,
            fw_self.astype(jnp.bfloat16),
            fw_neigh.astype(jnp.bfloat16),
            D)


if __name__ == "__main__":
    key = jax.random.PRNGKey(0)

    # Small shapes consistent with the module.  In the non-gcn path the
    # concatenated input to nn.Linear(input_dim + embed_dim, embed_dim) only
    # type-checks when input_dim == embed_dim, so F == D here.
    N = 64          # total graph nodes
    F = 32          # input_dim
    D = 32          # embed_dim
    B = 16          # batch of query nodes
    E = 256         # number of edges

    k_feat, k_edge, k_nodes, k_w, k_b = jax.random.split(key, 5)
    features = jax.random.normal(k_feat, (N, F), dtype=jnp.float32)
    edge_index = jax.random.randint(k_edge, (2, E), 0, N, dtype=jnp.int32)
    nodes = jax.random.permutation(k_nodes, N)[:B].astype(jnp.int32)

    # nn.Linear(F + D, D): weight [D, F+D], bias [D]
    bound = 1.0 / jnp.sqrt(float(F + D))
    weight = jax.random.uniform(k_w, (D, F + D), jnp.float32, -bound, bound)
    bias = jax.random.uniform(k_b, (D,), jnp.float32, -bound, bound)

    s, a, deg, fw_self, fw_neigh, d_out = prepare_encoder_operands(
        nodes, edge_index, features, weight, bias)
    out_padded = encoder_pallas(s, a, deg, fw_self, fw_neigh)
    out_padded = jax.block_until_ready(out_padded)
    out = out_padded[:, :d_out].astype(jnp.float32)

    # Pure-JAX f32 reference (concat form, identical to the PyTorch forward).
    src, dst = edge_index[0], edge_index[1]
    src_match = (src[None, :] == nodes[:, None]).astype(jnp.float32)
    dst_onehot = jax.nn.one_hot(dst, N, dtype=jnp.float32)
    binary_ref = ((src_match @ dst_onehot) > 0).astype(jnp.float32)
    deg_ref = jnp.maximum(binary_ref.sum(axis=1, keepdims=True), 1.0)
    a_mean = binary_ref / deg_ref
    self_feats = features[nodes]
    neigh_feats = a_mean @ features
    combined = jnp.concatenate([self_feats, neigh_feats], axis=1)
    ref = jnp.maximum(combined @ weight.T + bias, 0.0)

    assert out.shape == (B, D)
    # bf16 MXU operands + bf16 output -> tolerance loosened vs the f32 reference.
    assert jnp.allclose(out, ref, atol=3e-2, rtol=3e-2), "mismatch vs reference"
    # Padded lanes beyond D must be exactly zero (relu of zero-padded columns).
    assert bool(jnp.all(out_padded[:, d_out:] == 0.0))

    print("KERNEL_OK")
</pallas_src>

<mosaic_0001>
module attributes {stable_mosaic.version = 11 : i64} {
  func.func @encoder_kernel(%arg0: i32, %arg1: i32, %arg2: memref<16x128xbf16, #tpu.memory_space<vmem>>, %arg3: memref<16x128xbf16, #tpu.memory_space<vmem>>, %arg4: memref<16x1xf32, #tpu.memory_space<vmem>>, %arg5: memref<128x128xbf16, #tpu.memory_space<vmem>>, %arg6: memref<128x128xbf16, #tpu.memory_space<vmem>>, %arg7: memref<16x128xbf16, #tpu.memory_space<vmem>>, %arg8: memref<16x128xf32, #tpu.memory_space<vmem>>) attributes {dimension_semantics = [#tpu.dimension_semantics<parallel>, #tpu.dimension_semantics<arbitrary>], iteration_bounds = array<i64: 1, 1>, scalar_prefetch = 0 : i64, scratch_operands = 1 : i64, tpu.core_type = #tpu.core_type<tc>, window_params = [{transform_indices = @transform_0, window_bounds = array<i64: 16, 128>}, {transform_indices = @transform_1, window_bounds = array<i64: 16, 128>}, {transform_indices = @transform_2, window_bounds = array<i64: 16, 1>}, {pipeline_mode = #tpu.pipeline_mode<synchronous>, transform_indices = @transform_3, window_bounds = array<i64: 128, 128>}, {pipeline_mode = #tpu.pipeline_mode<synchronous>, transform_indices = @transform_4, window_bounds = array<i64: 128, 128>}, {transform_indices = @transform_5, window_bounds = array<i64: 16, 128>}]} {
    %c0_i32 = arith.constant 0 : i32
    %0 = arith.cmpi eq, %arg1, %c0_i32 : i32
    %1 = arith.extui %0 : i1 to i32
    %c0_i32_0 = arith.constant 0 : i32
    %2 = arith.cmpi ne, %1, %c0_i32_0 : i32
    scf.if %2 {
      %cst_17 = arith.constant 0.000000e+00 : f32
      %20 = vector.broadcast %cst_17 : f32 to vector<16x128xf32>
      %c0_18 = arith.constant 0 : index
      %c0_19 = arith.constant 0 : index
      %21 = vector.load %arg8[%c0_18, %c0_19] : memref<16x128xf32, #tpu.memory_space<vmem>>, vector<16x128xf32>
      tpu.vector_store %arg8[%c0_18, %c0_19], %20 {strides = array<i32>} : memref<16x128xf32, #tpu.memory_space<vmem>>, vector<16x128xf32>,
    } else {
    }
    %c0 = arith.constant 0 : index
    %c0_1 = arith.constant 0 : index
    %3 = vector.load %arg2[%c0, %c0_1] : memref<16x128xbf16, #tpu.memory_space<vmem>>, vector<16x128xbf16>
    %c0_2 = arith.constant 0 : index
    %c0_3 = arith.constant 0 : index
    %4 = vector.load %arg5[%c0_2, %c0_3] : memref<128x128xbf16, #tpu.memory_space<vmem>>, vector<128x128xbf16>
    %cst = arith.constant dense<0.000000e+00> : vector<16x128xf32>
    %5 = tpu.matmul %3, %4, %cst {dimension_numbers = #tpu.dot_dimension_numbers<[1], [0], [0], [1], [0, 0, 1, 1], [], []>} : vector<16x128xbf16>, vector<128x128xbf16>, vector<16x128xf32> -> vector<16x128xf32>
    %c0_4 = arith.constant 0 : index
    %c0_5 = arith.constant 0 : index
    %6 = vector.load %arg3[%c0_4, %c0_5] : memref<16x128xbf16, #tpu.memory_space<vmem>>, vector<16x128xbf16>
    %c0_6 = arith.constant 0 : index
    %c0_7 = arith.constant 0 : index
    %7 = vector.load %arg6[%c0_6, %c0_7] : memref<128x128xbf16, #tpu.memory_space<vmem>>, vector<128x128xbf16>
    %cst_8 = arith.constant dense<0.000000e+00> : vector<16x128xf32>
    %8 = tpu.matmul %6, %7, %cst_8 {dimension_numbers = #tpu.dot_dimension_numbers<[1], [0], [0], [1], [0, 0, 1, 1], [], []>} : vector<16x128xbf16>, vector<128x128xbf16>, vector<16x128xf32> -> vector<16x128xf32>
    %c0_9 = arith.constant 0 : index
    %c0_10 = arith.constant 0 : index
    %9 = vector.load %arg4[%c0_9, %c0_10] : memref<16x1xf32, #tpu.memory_space<vmem>>, vector<16x1xf32>
    %10 = tpu.reciprocal %9 {approx = true} : vector<16x1xf32> -> vector<16x1xf32>
    %c0_11 = arith.constant 0 : index
    %c0_12 = arith.constant 0 : index
    %11 = vector.load %arg8[%c0_11, %c0_12] : memref<16x128xf32, #tpu.memory_space<vmem>>, vector<16x128xf32>
    %12 = vector.broadcast %10 : vector<16x1xf32> to vector<16x128xf32>
    %13 = arith.mulf %8, %12 : vector<16x128xf32>
    %14 = arith.addf %5, %13 : vector<16x128xf32>
    %15 = arith.addf %11, %14 : vector<16x128xf32>
    %c0_13 = arith.constant 0 : index
    %c0_14 = arith.constant 0 : index
    %16 = vector.load %arg8[%c0_13, %c0_14] : memref<16x128xf32, #tpu.memory_space<vmem>>, vector<16x128xf32>
    tpu.vector_store %arg8[%c0_13, %c0_14], %15 {strides = array<i32>} : memref<16x128xf32, #tpu.memory_space<vmem>>, vector<16x128xf32>,
    %c0_i32_15 = arith.constant 0 : i32
    %17 = arith.cmpi eq, %arg1, %c0_i32_15 : i32
    %18 = arith.extui %17 : i1 to i32
    %c0_i32_16 = arith.constant 0 : i32
    %19 = arith.cmpi ne, %18, %c0_i32_16 : i32
    scf.if %19 {
      %c0_17 = arith.constant 0 : index
      %c0_18 = arith.constant 0 : index
      %20 = vector.load %arg8[%c0_17, %c0_18] : memref<16x128xf32, #tpu.memory_space<vmem>>, vector<16x128xf32>
      %cst_19 = arith.constant 0.000000e+00 : f32
      %21 = vector.broadcast %cst_19 : f32 to vector<16x128xf32>
      %22 = arith.maximumf %20, %21 : vector<16x128xf32>
      %23 = arith.truncf %22 : vector<16x128xf32> to vector<16x128xbf16>
      %c0_20 = arith.constant 0 : index
      %c0_21 = arith.constant 0 : index
      %24 = vector.load %arg7[%c0_20, %c0_21] : memref<16x128xbf16, #tpu.memory_space<vmem>>, vector<16x128xbf16>
      tpu.vector_store %arg7[%c0_20, %c0_21], %23 {strides = array<i32>} : memref<16x128xbf16, #tpu.memory_space<vmem>>, vector<16x128xbf16>,
    } else {
    }
    return
  }
  func.func @transform_0(%arg0: i32, %arg1: i32) -> (i32, i32) {
    %c0_i32 = arith.constant 0 : i32
    return %arg0, %arg1 : i32, i32
  }
  func.func @transform_1(%arg0: i32, %arg1: i32) -> (i32, i32) {
    %c0_i32 = arith.constant 0 : i32
    return %arg0, %arg1 : i32, i32
  }
  func.func @transform_2(%arg0: i32, %arg1: i32) -> (i32, i32) {
    %c0_i32 = arith.constant 0 : i32
    %c0_i32_0 = arith.constant 0 : i32
    return %arg0, %c0_i32 : i32, i32
  }
  func.func @transform_3(%arg0: i32, %arg1: i32) -> (i32, i32) {
    %c0_i32 = arith.constant 0 : i32
    %c0_i32_0 = arith.constant 0 : i32
    return %arg1, %c0_i32 : i32, i32
  }
  func.func @transform_4(%arg0: i32, %arg1: i32) -> (i32, i32) {
    %c0_i32 = arith.constant 0 : i32
    %c0_i32_0 = arith.constant 0 : i32
    return %arg1, %c0_i32 : i32, i32
  }
  func.func @transform_5(%arg0: i32, %arg1: i32) -> (i32, i32) {
    %c0_i32 = arith.constant 0 : i32
    %c0_i32_0 = arith.constant 0 : i32
    return %arg0, %c0_i32 : i32, i32
  }
}

</mosaic_0001>

<bundles_post_ra>
// kernel: encoder_pallas.1
= control target key start
LH: loop header
LB: loop body
LE: loop exit
PB: predicated region body
PF: predicated region fallthrough
CT: control target
= control target key end

     0   :  { %10 = vsyncpa [#allocation4], 0  ;;  %s534_s0 = inlined_call_operand.vmem [shape: bf16[16,128], index: 0, kind: input, shape index: {}]   ;;  %s535_s1 = inlined_call_operand.vmem [shape: bf16[16,128], index: 1, kind: input, shape index: {}]   ;;  %s536_s2 = inlined_call_operand.vmem [shape: f32[16,1], index: 2, kind: input, shape index: {}]   ;;  %s537_s3 = inlined_call_operand.hbm [shape: bf16[128,128], index: 3, kind: input, shape index: {}]   ;;  %s538_s4 = inlined_call_operand.hbm [shape: bf16[128,128], index: 4, kind: input, shape index: {}]   ;;  %s539_s5 = inlined_call_operand.hbm [shape: bf16[16,128], index: 5, kind: output, shape index: {}]  }
   0x1   :  { %11 = vsyncpa [#allocation7], 0 }
   0x2   :  { %12 = vsyncpa [#allocation5], 0  ;;  %s23_s20 = sshll.u32 %s537_s3, 4  ;;  %s468_s21 = smov [#allocation3]   ;;  %s24_s20 = int_to_ptr.hbm [resolvable:$true] %s23_s20 }
   0x3   :  { %s25_s22 = sshll.u32 %s468_s21, 4  ;;  %s36_s25 = sshll.u32 %s538_s4, 4  ;;  %s26_s22 = int_to_ptr.vmem [resolvable:$true] %s25_s22  ;;  %s37_s25 = int_to_ptr.hbm [resolvable:$true] %s36_s25 }
   0x4   :  { %s469_s26 = smov 64   ;;  %s470_s27 = smov 4  }
   0x5   :  { %31 = dma.hbm_to_vmem [thread:$0]  %s24_s20, 1024, %s26_s22, [#allocation4], %s469_s26, %s469_s26, %s470_s27  }
   0x6   :  { %s471_s28 = smov [#allocation6]  }
   0x7   :  { %s38_s29 = sshll.u32 %s471_s28, 4  ;;  %s39_s29 = int_to_ptr.vmem [resolvable:$true] %s38_s29 }
   0x8   :  { %44 = dma.hbm_to_vmem [thread:$0]  %s37_s25, 1024, %s39_s29, [#allocation7], %s469_s26, %s469_s26, %s470_s27  }
   0x9   :  { %462 = dma.done.wait [#allocation4], 1024  }
   0xa   :  { %463 = vsyncadd [#allocation4], 4294966272 }
   0xb   :  { %464 = dma.done.wait [#allocation7], 1024  }
   0xc   :  { %465 = vsyncadd [#allocation7], 4294966272  ;;  %v373_v0 = vld [vmem:[#allocation6 + $0x38] sm:$0xff]  ;;  %v372_v2 = vld [vmem:[#allocation6 + $0x30] sm:$0xff]  ;;  %v472_v4 = vmov 0   ;;  %s473_s10 = smov [#allocation8]  }
   0xd   :  { %v364_v1 = vld [vmem:[#allocation3 + $0x38] sm:$0xff]  ;;  %149 = vmatpush.bf16.msra.mxu0 %v373_v0  ;;  %v363_v3 = vld [vmem:[#allocation3 + $0x30] sm:$0xff]  ;;  %385 = vset.pattern.permute.xlu0 %v472_v4  ;;  %v371_v5 = vld [vmem:[#allocation6 + $0x28] sm:$0xff] }
   0xe   :  { %235 = vmatpush.bf16.msra.mxu1 %v364_v1  ;;  %v362_v6 = vld [vmem:[#allocation3 + $0x28] sm:$0xff]  ;;  %v163_v7 = vld [vmem:[%s536_s2] sm:$0xff]  ;;  %v369_v12 = vld [vmem:[#allocation6 + $0x18] sm:$0xff] }
   0xf   :  { %386 = vrcp.f32 %v163_v7  ;;  %v370_v8 = vld [vmem:[#allocation6 + $0x20] sm:$0xff]  ;;  %v164_v10 = vld [vmem:[%s536_s2 + $0x8] sm:$0xff]  ;;  %v360_v13 = vld [vmem:[#allocation3 + $0x18] sm:$0xff] }
  0x10   :  { %v361_v9 = vld [vmem:[#allocation3 + $0x20] sm:$0xff]  ;;  %388 = vrcp.f32 %v164_v10  ;;  %v368_v14 = vld [vmem:[#allocation6 + $0x10] sm:$0xff]  ;;  %v367_v17 = vld [vmem:[#allocation6 + $0x8] sm:$0xff] }
  0x11   :  { %150 = vmatpush.bf16.msra.mxu0 %v372_v2  ;;  %v359_v15 = vld [vmem:[#allocation3 + $0x10] sm:$0xff]  ;;  %v358_v18 = vld [vmem:[#allocation3 + $0x8] sm:$0xff]  ;;  %v366_v19 = vld [vmem:[#allocation6] sm:$0xff] }
  0x12   :  { %236 = vmatpush.bf16.msra.mxu1 %v363_v3  ;;  %v357_v20 = vld [vmem:[#allocation3] sm:$0xff] }
  0x13   :  { %v365_v21 = vld [vmem:[%s535_s1] sm:$0xff]  ;;  %s268_s1 = sshll.u32 %s473_s10, 4  ;;  %s269_s1 = int_to_ptr.vmem [resolvable:$true] %s268_s1 }
  0x14   :  { %v356_v22 = vld [vmem:[%s534_s0] sm:$0xff]  ;;  %s270_s0 = sshll.u32 %s539_s5, 4  ;;  %s271_s0 = int_to_ptr.hbm [resolvable:$true] %s270_s0 }
  0x15   :  { %151 = vmatpush.bf16.msra.mxu0 %v371_v5  ;;  %v387_v11 = vpop.eup %386 }
  0x16   :  { %237 = vmatpush.bf16.msra.mxu1 %v362_v6  ;;  %171 = vperm.xlu0 %385, %v387_v11   ;;  %v389_v16 = vpop.eup %388 }
  0x19   :  { %152 = vmatpush.bf16.msra.mxu0 %v370_v8 }
  0x1a   :  { %238 = vmatpush.bf16.msra.mxu1 %v361_v9 }
  0x1d   :  { %153 = vmatpush.bf16.msra.mxu0 %v369_v12 }
  0x1e   :  { %239 = vmatpush.bf16.msra.mxu1 %v360_v13  ;;  %176 = vperm.xlu0 %385, %v389_v16  }
  0x21   :  { %154 = vmatpush.bf16.msra.mxu0 %v368_v14 }
  0x22   :  { %240 = vmatpush.bf16.msra.mxu1 %v359_v15 }
  0x25   :  { %155 = vmatpush.bf16.msra.mxu0 %v367_v17 }
  0x26   :  { %241 = vmatpush.bf16.msra.mxu1 %v358_v18 }
  0x29   :  { %156 = vmatpush.bf16.msra.mxu0 %v366_v19 }
  0x2a   :  { %242 = vmatpush.bf16.msra.mxu1 %v357_v20 }
  0x2c   :  { %157 = vmatmul.bf16.vlgmr.msra.gmra.mxu0 %v365_v21 }
  0x2d   :  { %243 = vmatmul.bf16.vlgmr.msra.gmra.mxu1 %v356_v22 }
  0x88   :  { %v172_v23 = vpop.permute.xlu0 %171 }
  0x90   :  { %v177_v27 = vpop.permute.xlu0 %176 }
  0xa9   :  { %v158_v24 = vpop.f32.mrf.mxu0 }
  0xaa   :  { %v244_v25 = vpop.f32.mrf.mxu1  ;;  %v179_v26 = vmul.f32 %v172_v23, %v158_v24 }
  0xac   :  { %v245_v29 = vadd.f32 %v244_v25, %v179_v26 }
  0xae   :  { %v258_v33 = vmax.f32 %v245_v29, 0.0 }
  0xb1   :  { %v160_v28 = vpop.f32.mrf.mxu0 }
  0xb2   :  { %v180_v30 = vmul.f32 %v177_v27, %v160_v28  ;;  %v246_v31 = vpop.f32.mrf.mxu1 }
  0xb4   :  { %v247_v32 = vadd.f32 %v246_v31, %v180_v30 }
  0xb6   :  { %v259_v34 = vmax.f32 %v247_v32, 0.0 }
  0xb8   :  { %v377_v35 = vpack.c.bf16 %v259_v34, %v258_v33 }
  0xba   :  { %378 = vst [vmem:[#allocation8] sm:$0xff] %v377_v35  }
  0xbb   :  { %276 = dma.vmem_to_hbm [thread:$0]  %s269_s1, 128, %s271_s0, [#allocation5], %s469_s26, %s469_s26, %s470_s27  }
  0xbc   :  { %466 = dma.done.wait [#allocation5], 128  }
  0xbd   :  { %467 = vsyncadd [#allocation5], 4294967168 }
  0xbe   :  { %281 = vsyncpa [#allocation4], 1 }
  0xbf   :  { %282 = vsyncpa [#allocation7], 1 }
  0xc0   :  { %283 = vsyncpa [#allocation5], 1 }

</bundles_post_ra>
